<compile_context>
chip_gen: v5e
topology: v5e:2x2
jax: 0.10.0
libtpu: 0.0.40
codegen_flags: <defaults>
</compile_context>

<pallas_src>
from functools import partial

import jax
import jax.numpy as jnp
from jax.experimental import pallas as pl
from jax.experimental.pallas import tpu as pltpu

EPS = 1e-5


# ---------------------------------------------------------------------------
# Kernel
# ---------------------------------------------------------------------------
def _make_kernel(num_hidden, hd0, hd0_pad, out_dim, compute_dtype):
  """Feature-major kernel (batch on the 128-wide lane axis).

  Ref order:
    [x_t, W_stk, b_stk, (W_i, b_i for i=1..H-1), Wf_deep, out_t]
      x_t:    (F, tile_b)                       compute dtype
      W_stk:  (hd0_pad + out_dim, F)            rows [0:hd0)=layer0, [hd0_pad:)=wide
      b_stk:  (hd0_pad + out_dim, 1)  f32       rows [0:hd0)=b0, [hd0_pad:)=final bias
      W_i:    (hd_i, hd_{i-1})                  b_i: (hd_i, 1) f32
      Wf_deep:(out_dim, hd_last)
      out_t:  (out_dim, tile_b)       f32
  When num_hidden == 0, refs are [x_t, W_stk, b_stk, out_t] with
  W_stk = folded (out_dim, F) predictor weight.
  """

  def _silu(z):
    # z*sigmoid(z) == 0.5*z*(1 + tanh(0.5*z)); single EUP push per element,
    # exact math (no approx reciprocal) -> safe for the f32 validation path.
    return 0.5 * z * (1.0 + jnp.tanh(0.5 * z))

  def kernel(*refs):
    x_ref, wstk_ref, bstk_ref = refs[0], refs[1], refs[2]
    o_ref = refs[-1]

    if num_hidden == 0:
      z = jnp.dot(wstk_ref[...], x_ref[...],
                  preferred_element_type=jnp.float32) + bstk_ref[...]
      o_ref[...] = 5.0 * jnp.tanh(z)
      return

    wfd_ref = refs[-2]

    # Layer 0 + wide path in ONE matmul against x; x dies here.
    zs = jnp.dot(wstk_ref[...], x_ref[...],
                 preferred_element_type=jnp.float32) + bstk_ref[...]
    h = _silu(zs[:hd0])                                # (hd0, tile_b) f32
    wide = zs[hd0_pad:hd0_pad + out_dim]               # includes final bias

    for i in range(1, num_hidden):
      w_ref = refs[3 + 2 * (i - 1)]
      b_ref = refs[4 + 2 * (i - 1)]
      z = jnp.dot(w_ref[...], h.astype(compute_dtype),
                  preferred_element_type=jnp.float32) + b_ref[...]
      h = _silu(z)

    out = wide + jnp.dot(wfd_ref[...], h.astype(compute_dtype),
                         preferred_element_type=jnp.float32)
    o_ref[...] = 5.0 * jnp.tanh(out)

  return kernel


# ---------------------------------------------------------------------------
# Wrapper
# ---------------------------------------------------------------------------
def _choose_tile_b(batch, target=4096):
  """Lane-tile width: ~`target` columns, even grid (>=2) so both v7x TCs work."""
  b128 = pl.cdiv(batch, 128) * 128
  if b128 <= 256:
    return 128
  n_pairs = max(1, pl.cdiv(b128, 2 * target))
  grid = 2 * n_pairs
  return pl.cdiv(b128, grid * 128) * 128


@partial(jax.jit, static_argnames=("tile_b",))
def wide_deep_forward(x, kparams, *, tile_b=None):
  """x: (B, F) float32.  kparams: output of prepare_params()."""
  B, F = x.shape
  W_stk = kparams["W_stk"]
  b_stk = kparams["b_stk"]
  Ws, bs, wfd = kparams["Ws"], kparams["bs"], kparams["Wf_deep"]
  cdt = W_stk.dtype                         # compute dtype (bf16 or f32)

  # Static metadata derived from shapes (keeps the jitted pytree array-only).
  if wfd is None:
    num_hidden, out_dim, hd0, hd0_pad = 0, W_stk.shape[0], 0, 0
  else:
    num_hidden = len(Ws) + 1
    out_dim = wfd.shape[0]
    hd0_pad = W_stk.shape[0] - out_dim
    hd0 = Ws[0].shape[1] if num_hidden >= 2 else wfd.shape[1]

  if tile_b is None:
    tile_b = _choose_tile_b(B)
  if tile_b % 128 != 0:
    raise ValueError(f"tile_b must be a multiple of 128, got {tile_b}")

  grid = pl.cdiv(B, tile_b)
  if grid > 1 and grid % 2 == 1:
    grid += 1                               # even grid -> balanced v7x megacore
  Bp = grid * tile_b

  # Pad + transpose + cast in one fused XLA pass (we are under jit).
  # Feature-major: batch on the 128-wide lane axis; padded cols are sliced off.
  x_t = jnp.pad(x, ((0, Bp - B), (0, 0))).T.astype(cdt)      # (F, Bp)

  flat_inputs = [x_t, W_stk, b_stk]
  for W, b in zip(Ws, bs):
    flat_inputs += [W, b]
  if wfd is not None:
    flat_inputs.append(wfd)

  in_specs = [pl.BlockSpec((F, tile_b), lambda i: (0, i))]
  for p in flat_inputs[1:]:
    # Grid-invariant weights/biases: full-array block, fixed index.
    # TODO(synk): single-buffer / hoist to scratch if hidden dims ever grow
    # large enough for double-buffered weights to matter in VMEM (v7x: 64 MiB).
    in_specs.append(pl.BlockSpec(p.shape, lambda i: (0, 0)))

  out_specs = pl.BlockSpec((out_dim, tile_b), lambda i: (0, i))

  y_t = pl.pallas_call(
      _make_kernel(num_hidden, hd0, hd0_pad, out_dim, cdt),
      out_shape=jax.ShapeDtypeStruct((out_dim, Bp), jnp.float32),
      grid_spec=pltpu.PrefetchScalarGridSpec(
          num_scalar_prefetch=0,
          grid=(grid,),
          in_specs=in_specs,
          out_specs=out_specs,
      ),
      compiler_params=pltpu.CompilerParams(
          dimension_semantics=("parallel",),       # batch tiles -> megacore
          vmem_limit_bytes=48 * 1024 * 1024,       # safe on v7x's 64 MiB VMEM
      ),
  )(*flat_inputs)

  return y_t.T[:B]                                 # (B, out_dim)


# ---------------------------------------------------------------------------
# Parameters (PyTorch layouts) + host-side BN folding
# ---------------------------------------------------------------------------
def init_params(key, input_features, hidden_dims, output_dim):
  """Deterministic synthetic parameters in PyTorch layout/shapes."""
  H = len(hidden_dims)
  n_keys = 4 + 6 * H + 2
  keys = iter(jax.random.split(key, n_keys))

  def vec(k, n, scale=1.0, positive=False):
    v = scale * jax.random.normal(k, (n,), dtype=jnp.float32)
    return jnp.abs(v) + 0.5 if positive else v

  p = {"hidden_dims": tuple(hidden_dims)}
  # Input BatchNorm1d (keys deliberately distinct from hidden-layer-0 keys).
  p["bn_g"] = vec(next(keys), input_features, 0.5) + 1.0
  p["bn_b"] = vec(next(keys), input_features, 0.1)
  p["bn_m"] = vec(next(keys), input_features, 0.1)
  p["bn_v"] = vec(next(keys), input_features, 0.2, positive=True)

  in_f = input_features
  for i, hd in enumerate(hidden_dims):
    # nn.Linear(in_f, hd): weight (hd, in_f), bias (hd,)
    p[f"W{i}"] = (jax.random.normal(next(keys), (hd, in_f), dtype=jnp.float32)
                  / jnp.sqrt(jnp.float32(in_f)))
    p[f"b{i}"] = vec(next(keys), hd, 0.1)
    p[f"g{i}"] = vec(next(keys), hd, 0.5) + 1.0
    p[f"beta{i}"] = vec(next(keys), hd, 0.1)
    p[f"m{i}"] = vec(next(keys), hd, 0.1)
    p[f"v{i}"] = vec(next(keys), hd, 0.2, positive=True)
    in_f = hd

  # predictor: nn.Linear(in_f + input_features, output_dim)
  total_in = in_f + input_features
  p["Wf"] = (jax.random.normal(next(keys), (output_dim, total_in),
                               dtype=jnp.float32)
             / jnp.sqrt(jnp.float32(total_in)))
  p["bf"] = vec(next(keys), output_dim, 0.1)
  return p


def prepare_params(raw, compute_dtype=jnp.bfloat16):
  """Fold eval-mode BatchNorms into the adjacent Linears (one-time, host-side),
  stack the wide-path weight onto layer 0, and cast weights to the compute
  dtype (biases stay f32)."""
  F = raw["bn_g"].shape[0]
  H = len(raw["hidden_dims"])
  out_dim = raw["bf"].shape[0]

  # input BN:  x0 = a0 * x + c0
  a0 = raw["bn_g"] * jax.lax.rsqrt(raw["bn_v"] + EPS)
  c0 = raw["bn_b"] - raw["bn_m"] * a0

  Ws, bs = [], []
  for i in range(H):
    W = raw[f"W{i}"]                      # (hd, in) torch layout
    b = raw[f"b{i}"]                      # (hd,)
    s = raw[f"g{i}"] * jax.lax.rsqrt(raw[f"v{i}"] + EPS)
    t = raw[f"beta{i}"] - raw[f"m{i}"] * s
    Wi = W * s[:, None]                   # BN(Wx+b) = (s*W)x + (s*b+t)
    bi = s * b + t
    if i == 0:
      # input BN folded into layer 0: W'(a0*x + c0) + b' = (W'*a0)x + (W'c0+b')
      bi = bi + Wi @ c0
      Wi = Wi * a0[None, :]
    Ws.append(Wi)
    bs.append(bi)

  # predictor on concat([x0, features]): first F input columns multiply x0.
  wfw = raw["Wf"][:, :F]                  # (out_dim, F)
  wfd = raw["Wf"][:, F:]                  # (out_dim, hd_last) (or F if H == 0)
  bf = raw["bf"]
  bf = bf + wfw @ c0                      # fold input BN into the wide path
  wfw = wfw * a0[None, :]

  if H == 0:
    # features == x0 -> fold both halves of the predictor into one matrix.
    bf = bf + wfd @ c0
    W_all = wfw + wfd * a0[None, :]
    return {"W_stk": W_all.astype(compute_dtype),
            "b_stk": bf[:, None].astype(jnp.float32),
            "Ws": [], "bs": [], "Wf_deep": None}

  hd0 = Ws[0].shape[0]
  hd0_pad = -(-hd0 // 8) * 8              # pad layer-0 rows to sublane multiple
  W_stk = jnp.zeros((hd0_pad + out_dim, F), jnp.float32)
  W_stk = W_stk.at[:hd0].set(Ws[0]).at[hd0_pad:].set(wfw)
  b_stk = jnp.zeros((hd0_pad + out_dim, 1), jnp.float32)
  b_stk = b_stk.at[:hd0, 0].set(bs[0]).at[hd0_pad:, 0].set(bf)

  return {"W_stk": W_stk.astype(compute_dtype),
          "b_stk": b_stk,                                   # f32
          "Ws": [W.astype(compute_dtype) for W in Ws[1:]],
          "bs": [b[:, None] for b in bs[1:]],               # f32
          "Wf_deep": wfd.astype(compute_dtype)}


# ---------------------------------------------------------------------------
# Pure-JAX reference (mirrors the PyTorch eval-mode forward, raw params)
# ---------------------------------------------------------------------------
def reference_forward(x, raw):
  H = len(raw["hidden_dims"])
  x0 = ((x - raw["bn_m"]) * jax.lax.rsqrt(raw["bn_v"] + EPS) * raw["bn_g"]
        + raw["bn_b"])
  h = x0
  for i in range(H):
    z = h @ raw[f"W{i}"].T + raw[f"b{i}"]
    z = ((z - raw[f"m{i}"]) * jax.lax.rsqrt(raw[f"v{i}"] + EPS) * raw[f"g{i}"]
         + raw[f"beta{i}"])
    h = z * jax.nn.sigmoid(z)
  cat = jnp.concatenate([x0, h], axis=-1)
  return 5.0 * jnp.tanh(cat @ raw["Wf"].T + raw["bf"])


# ---------------------------------------------------------------------------
if __name__ == "__main__":
  B = 1000                      # not a multiple of 128 -> exercises padding
  INPUT_FEATURES = 16
  HIDDEN_DIMS = [32, 32]
  OUTPUT_DIM = 1

  key = jax.random.PRNGKey(0)
  kx, kp = jax.random.split(key)
  x = jax.random.normal(kx, (B, INPUT_FEATURES), dtype=jnp.float32)

  raw = init_params(kp, INPUT_FEATURES, HIDDEN_DIMS, OUTPUT_DIM)
  y_ref = reference_forward(x, raw)

  # f32 compute path: tight semantic check against the PyTorch-style reference.
  kparams32 = prepare_params(raw, compute_dtype=jnp.float32)
  y32 = jax.block_until_ready(wide_deep_forward(x, kparams32))
  assert y32.shape == (B, OUTPUT_DIM)
  err32 = float(jnp.max(jnp.abs(y32 - y_ref)))
  assert jnp.allclose(y32, y_ref, atol=5e-3, rtol=5e-3), err32

  # bf16 compute path (production default: MXU-native, halves the HBM x stream).
  kparams16 = prepare_params(raw, compute_dtype=jnp.bfloat16)
  y16 = jax.block_until_ready(wide_deep_forward(x, kparams16))
  assert y16.shape == (B, OUTPUT_DIM)
  err16 = float(jnp.max(jnp.abs(y16 - y_ref)))
  assert err16 < 0.5 and float(jnp.mean(jnp.abs(y16 - y_ref))) < 0.05, err16

  print("KERNEL_OK")
</pallas_src>

<mosaic_0001>
module attributes {stable_mosaic.version = 11 : i64} {
  func.func @kernel(%arg0: i32, %arg1: memref<16x512xf32, #tpu.memory_space<vmem>>, %arg2: memref<33x16xf32, #tpu.memory_space<vmem>>, %arg3: memref<33x1xf32, #tpu.memory_space<vmem>>, %arg4: memref<32x32xf32, #tpu.memory_space<vmem>>, %arg5: memref<32x1xf32, #tpu.memory_space<vmem>>, %arg6: memref<1x32xf32, #tpu.memory_space<vmem>>, %arg7: memref<1x512xf32, #tpu.memory_space<vmem>>) attributes {dimension_semantics = [#tpu.dimension_semantics<parallel>], iteration_bounds = array<i64: 2>, scalar_prefetch = 0 : i64, scratch_operands = 0 : i64, tpu.core_type = #tpu.core_type<tc>, window_params = [{transform_indices = @transform_0, window_bounds = array<i64: 16, 512>}, {pipeline_mode = #tpu.pipeline_mode<synchronous>, transform_indices = @transform_1, window_bounds = array<i64: 33, 16>}, {pipeline_mode = #tpu.pipeline_mode<synchronous>, transform_indices = @transform_2, window_bounds = array<i64: 33, 1>}, {pipeline_mode = #tpu.pipeline_mode<synchronous>, transform_indices = @transform_3, window_bounds = array<i64: 32, 32>}, {pipeline_mode = #tpu.pipeline_mode<synchronous>, transform_indices = @transform_4, window_bounds = array<i64: 32, 1>}, {pipeline_mode = #tpu.pipeline_mode<synchronous>, transform_indices = @transform_5, window_bounds = array<i64: 1, 32>}, {transform_indices = @transform_6, window_bounds = array<i64: 1, 512>}]} {
    %c0 = arith.constant 0 : index
    %c0_0 = arith.constant 0 : index
    %0 = vector.load %arg2[%c0, %c0_0] : memref<33x16xf32, #tpu.memory_space<vmem>>, vector<33x16xf32>
    %c0_1 = arith.constant 0 : index
    %c0_2 = arith.constant 0 : index
    %1 = vector.load %arg1[%c0_1, %c0_2] : memref<16x512xf32, #tpu.memory_space<vmem>>, vector<16x512xf32>
    %cst = arith.constant dense<0.000000e+00> : vector<33x512xf32>
    %2 = tpu.matmul %0, %1, %cst {dimension_numbers = #tpu.dot_dimension_numbers<[1], [0], [0], [1], [0, 0, 1, 1], [], []>} : vector<33x16xf32>, vector<16x512xf32>, vector<33x512xf32> -> vector<33x512xf32>
    %c0_3 = arith.constant 0 : index
    %c0_4 = arith.constant 0 : index
    %3 = vector.load %arg3[%c0_3, %c0_4] : memref<33x1xf32, #tpu.memory_space<vmem>>, vector<33x1xf32>
    %4 = vector.broadcast %3 : vector<33x1xf32> to vector<33x512xf32>
    %5 = arith.addf %2, %4 : vector<33x512xf32>
    %6 = vector.extract_strided_slice %5 {offsets = [0, 0], sizes = [32, 512], strides = [1, 1]} : vector<33x512xf32> to vector<32x512xf32>
    %cst_5 = arith.constant 5.000000e-01 : f32
    %7 = vector.broadcast %cst_5 : f32 to vector<32x512xf32>
    %8 = arith.mulf %7, %6 : vector<32x512xf32>
    %cst_6 = arith.constant 5.000000e-01 : f32
    %9 = vector.broadcast %cst_6 : f32 to vector<32x512xf32>
    %10 = arith.mulf %9, %6 : vector<32x512xf32>
    %11 = math.tanh %10 : vector<32x512xf32>
    %cst_7 = arith.constant 1.000000e+00 : f32
    %12 = vector.broadcast %cst_7 : f32 to vector<32x512xf32>
    %13 = arith.addf %12, %11 : vector<32x512xf32>
    %14 = arith.mulf %8, %13 : vector<32x512xf32>
    %15 = vector.extract_strided_slice %5 {offsets = [32, 0], sizes = [1, 512], strides = [1, 1]} : vector<33x512xf32> to vector<1x512xf32>
    %c0_8 = arith.constant 0 : index
    %c0_9 = arith.constant 0 : index
    %16 = vector.load %arg4[%c0_8, %c0_9] : memref<32x32xf32, #tpu.memory_space<vmem>>, vector<32x32xf32>
    %cst_10 = arith.constant dense<0.000000e+00> : vector<32x512xf32>
    %17 = tpu.matmul %16, %14, %cst_10 {dimension_numbers = #tpu.dot_dimension_numbers<[1], [0], [0], [1], [0, 0, 1, 1], [], []>} : vector<32x32xf32>, vector<32x512xf32>, vector<32x512xf32> -> vector<32x512xf32>
    %c0_11 = arith.constant 0 : index
    %c0_12 = arith.constant 0 : index
    %18 = vector.load %arg5[%c0_11, %c0_12] : memref<32x1xf32, #tpu.memory_space<vmem>>, vector<32x1xf32>
    %19 = vector.broadcast %18 : vector<32x1xf32> to vector<32x512xf32>
    %20 = arith.addf %17, %19 : vector<32x512xf32>
    %cst_13 = arith.constant 5.000000e-01 : f32
    %21 = vector.broadcast %cst_13 : f32 to vector<32x512xf32>
    %22 = arith.mulf %21, %20 : vector<32x512xf32>
    %cst_14 = arith.constant 5.000000e-01 : f32
    %23 = vector.broadcast %cst_14 : f32 to vector<32x512xf32>
    %24 = arith.mulf %23, %20 : vector<32x512xf32>
    %25 = math.tanh %24 : vector<32x512xf32>
    %cst_15 = arith.constant 1.000000e+00 : f32
    %26 = vector.broadcast %cst_15 : f32 to vector<32x512xf32>
    %27 = arith.addf %26, %25 : vector<32x512xf32>
    %28 = arith.mulf %22, %27 : vector<32x512xf32>
    %c0_16 = arith.constant 0 : index
    %c0_17 = arith.constant 0 : index
    %29 = vector.load %arg6[%c0_16, %c0_17] : memref<1x32xf32, #tpu.memory_space<vmem>>, vector<1x32xf32>
    %cst_18 = arith.constant dense<0.000000e+00> : vector<1x512xf32>
    %30 = tpu.matmul %29, %28, %cst_18 {dimension_numbers = #tpu.dot_dimension_numbers<[1], [0], [0], [1], [0, 0, 1, 1], [], []>} : vector<1x32xf32>, vector<32x512xf32>, vector<1x512xf32> -> vector<1x512xf32>
    %31 = arith.addf %15, %30 : vector<1x512xf32>
    %32 = math.tanh %31 : vector<1x512xf32>
    %cst_19 = arith.constant 5.000000e+00 : f32
    %33 = vector.broadcast %cst_19 : f32 to vector<1x512xf32>
    %34 = arith.mulf %33, %32 : vector<1x512xf32>
    %c0_20 = arith.constant 0 : index
    %c0_21 = arith.constant 0 : index
    %35 = vector.load %arg7[%c0_20, %c0_21] : memref<1x512xf32, #tpu.memory_space<vmem>>, vector<1x512xf32>
    tpu.vector_store %arg7[%c0_20, %c0_21], %34 {strides = array<i32>} : memref<1x512xf32, #tpu.memory_space<vmem>>, vector<1x512xf32>,
    return
  }
  func.func @transform_0(%arg0: i32) -> (i32, i32) {
    %c0_i32 = arith.constant 0 : i32
    %c0_i32_0 = arith.constant 0 : i32
    return %c0_i32, %arg0 : i32, i32
  }
  func.func @transform_1(%arg0: i32) -> (i32, i32) {
    %c0_i32 = arith.constant 0 : i32
    %c0_i32_0 = arith.constant 0 : i32
    %c0_i32_1 = arith.constant 0 : i32
    return %c0_i32, %c0_i32_0 : i32, i32
  }
  func.func @transform_2(%arg0: i32) -> (i32, i32) {
    %c0_i32 = arith.constant 0 : i32
    %c0_i32_0 = arith.constant 0 : i32
    %c0_i32_1 = arith.constant 0 : i32
    return %c0_i32, %c0_i32_0 : i32, i32
  }
  func.func @transform_3(%arg0: i32) -> (i32, i32) {
    %c0_i32 = arith.constant 0 : i32
    %c0_i32_0 = arith.constant 0 : i32
    %c0_i32_1 = arith.constant 0 : i32
    return %c0_i32, %c0_i32_0 : i32, i32
  }
  func.func @transform_4(%arg0: i32) -> (i32, i32) {
    %c0_i32 = arith.constant 0 : i32
    %c0_i32_0 = arith.constant 0 : i32
    %c0_i32_1 = arith.constant 0 : i32
    return %c0_i32, %c0_i32_0 : i32, i32
  }
  func.func @transform_5(%arg0: i32) -> (i32, i32) {
    %c0_i32 = arith.constant 0 : i32
    %c0_i32_0 = arith.constant 0 : i32
    %c0_i32_1 = arith.constant 0 : i32
    return %c0_i32, %c0_i32_0 : i32, i32
  }
  func.func @transform_6(%arg0: i32) -> (i32, i32) {
    %c0_i32 = arith.constant 0 : i32
    %c0_i32_0 = arith.constant 0 : i32
    return %c0_i32, %arg0 : i32, i32
  }
}

</mosaic_0001>

<bundles_post_ra>
// kernel: wide_deep_forward.1
= control target key start
LH: loop header
LB: loop body
LE: loop exit
PB: predicated region body
PF: predicated region fallthrough
CT: control target
= control target key end

     0   :  { %s1142_s21 = smov 0   ;;  %s1144_s22 = smov 0   ;;  %s1381_s0 = inlined_call_operand.vmem [shape: f32[16,1024], index: 0, kind: input, shape index: {}]   ;;  %s1382_s1 = inlined_call_operand.vmem [shape: f32[33,16], index: 1, kind: input, shape index: {}]   ;;  %s1383_s2 = inlined_call_operand.vmem [shape: f32[33,1], index: 2, kind: input, shape index: {}]   ;;  %s1384_s3 = inlined_call_operand.vmem [shape: f32[32,32], index: 3, kind: input, shape index: {}]   ;;  %s1385_s4 = inlined_call_operand.vmem [shape: f32[32,1], index: 4, kind: input, shape index: {}]   ;;  %s1386_s5 = inlined_call_operand.vmem [shape: f32[1,32], index: 5, kind: input, shape index: {}]   ;;  %s1387_s6 = inlined_call_operand.vmem [shape: f32[1,1024], index: 6, kind: output, shape index: {}]  }
   0x1   :  { %s1146_s23 = smov 0  }
   0x2 LB: > { %s929_s24 = sadd.s32 4294967295, %s1104_s23   ;;  %s1159_s25 = sadd.s32 1, %s1104_s23   ;;  %s1104_s23 = sphi %s1146_s23, %s1390_s23   ;;  %s1100_s22 = sphi %s1144_s22, %s1389_s22   ;;  %s1096_s21 = sphi %s1142_s21, %s1388_s21  }
   0x3   : > { %s20_s26 = ssub.s32 %s1104_s23, %s1159_s25  ;;  %s23_s27 = sadd.s32 1, %s1100_s22 }
   0x4   : > { %p21_p0 = scmp.eq.s32.totalorder %s20_s26, 0  ;;  %p30_p1 = scmp.ne.s32.totalorder %s1100_s22, %s1096_s21 }
   0x5   : > { %p31_p2 = scmp.eq.s32.totalorder %s1104_s23, 0  ;;  %p932_p4 = scmp.ge.s32.totalorder %s1104_s23, 2 }
   0x6   : > { %s1168_s28 = scalar_select %p21_p0, %s1100_s22, %s23_s27  }
   0x7   : > { %p32_p3 = por %p31_p2, %p30_p1  ;;  %202 = sbr.rel (%p932_p4) target bundleno = 24 (0x18), region = 36 }
   0xc   : > { %205 = sbr.rel (!%p32_p3) target bundleno = 24 (0x18), region = 40  ;;  %s207_s29 = sand.u32 (%p32_p3), 1, %s1100_s22  }
   0xd   : > { %s981_s30 = sshll.u32 (%p32_p3), %s1104_s23, 5  ;;  %s933_s7 = sshll.u32 (%p32_p3), %s207_s29, 6 }
   0xe   : > { %s212_s10 = scalar_lea.vmem (%p32_p3), %s1381_s0, %s981_s30  ;;  %s209_s11 = scalar_lea.vmem (%p32_p3), [#allocation2], %s933_s7 }
   0xf   : > { %v225_v0 = vld [vmem:[%s212_s10] sm:$0xff] (%p32_p3)  ;;  %v227_v1 = vld [vmem:[%s212_s10 + $0x8] sm:$0xff] (%p32_p3)  ;;  %v229_v2 = vld [vmem:[%s212_s10 + $0x10] sm:$0xff] (%p32_p3) }
  0x10   : > { %226 = vst [vmem:[%s209_s11] sm:$0xff] (%p32_p3), %v225_v0  ;;  %v231_v3 = vld [vmem:[%s212_s10 + $0x18] sm:$0xff] (%p32_p3)  ;;  %v233_v4 = vld [vmem:[%s212_s10 + $0x40] sm:$0xff] (%p32_p3)  ;;  %v235_v5 = vld [vmem:[%s212_s10 + $0x48] sm:$0xff] (%p32_p3) }
  0x11   : > { %228 = vst [vmem:[%s209_s11 + $0x8] sm:$0xff] %v227_v1  ;;  %v237_v6 = vld [vmem:[%s212_s10 + $0x50] sm:$0xff]  ;;  %v239_v7 = vld [vmem:[%s212_s10 + $0x58] sm:$0xff] }
  0x12   : > { %230 = vst [vmem:[%s209_s11 + $0x10] sm:$0xff] %v229_v2 }
  0x13   : > { %232 = vst [vmem:[%s209_s11 + $0x18] sm:$0xff] %v231_v3 }
  0x14   : > { %234 = vst [vmem:[%s209_s11 + $0x20] sm:$0xff] %v233_v4 }
  0x15   : > { %236 = vst [vmem:[%s209_s11 + $0x28] sm:$0xff] %v235_v5 }
  0x16   : > { %238 = vst [vmem:[%s209_s11 + $0x30] sm:$0xff] %v237_v6 }
  0x17   : > { %240 = vst [vmem:[%s209_s11 + $0x38] sm:$0xff] %v239_v7 }
  0x18 PF: > { %p936_p5 = scmp.ge.s32.totalorder %s1104_s23, 1  ;;  %p245_p6 = scmp.lt.s32.totalorder %s1104_s23, 3 }
  0x1a   : > { %p246_p7 = pnand %p936_p5, %p245_p6 }
  0x1b   : > { %s252_s12 = sand.u32 (!%p246_p7), 1, %s1096_s21  }
  0x1c   : > { %249 = sbr.rel (%p246_p7) target bundleno = 546 (0x222), region = 63  ;;  %s937_s15 = sshll.u32 (!%p246_p7), %s252_s12, 6 }
  0x1d   : > { %s254_s18 = scalar_lea.vmem (!%p246_p7), [#allocation2], %s937_s15  ;;  %s938_s15 = sshll.u32 (!%p246_p7), %s929_s24, 2 }
  0x1e   : > { %p282_p8 = scmp.lt.s32.totalorder (!%p246_p7), %s938_s15, 7 }
  0x21   : > { %v300_v8 = vld [vmem:[%s1383_s2 + $0x8] sm:$0xff]  ;;  %v1106_v9 = vmov 0   ;;  %v302_v10 = vld [vmem:[%s1383_s2 + $0x18] sm:$0xff]  ;;  %v295_v11 = vld [vmem:[%s254_s18 + $0x20] sm:$0xff]  ;;  %vm329_vm0 = vcmask 130048   ;;  %vm565_vm1 = vcmask 261120  }
  0x22   : > { %1008 = vset.pattern.permute.xlu1 %v1106_v9  ;;  %1007 = vset.pattern.permute.xlu0 %v1106_v9  ;;  %v296_v12 = vld [vmem:[%s254_s18 + $0x28] sm:$0xff]  ;;  %v297_v13 = vld [vmem:[%s254_s18 + $0x30] sm:$0xff]  ;;  %v298_v14 = vld [vmem:[%s254_s18 + $0x38] sm:$0xff]  ;;  %vm861_vm2 = vcmask 1040384   ;;  %s1392_s15 = smov (!%p282_p8, %s938_s15), 7  ;;  %vm863_vm3 = vcmask 1042434  }
  0x23   : > { %311 = vperm.xlu1 %1008, %v300_v8   ;;  %321 = vperm.xlu0 %1007, %v302_v10   ;;  %v291_v15 = vld [vmem:[%s254_s18] sm:$0xff]  ;;  %v292_v16 = vld [vmem:[%s254_s18 + $0x8] sm:$0xff]  ;;  %v293_v17 = vld [vmem:[%s254_s18 + $0x10] sm:$0xff]  ;;  %vm865_vm4 = vcmask 1041408  }
  0x24   : > { %1009 = vset.pattern.permute.xlu2 %v1106_v9  ;;  %359 = vmatpush.msra.mxu0 %v295_v11  ;;  %v294_v18 = vld [vmem:[%s254_s18 + $0x18] sm:$0xff]  ;;  %v286_v19 = vld [vmem:[%s1382_s1] sm:$0xff]  ;;  %v301_v21 = vld [vmem:[%s1383_s2 + $0x10] sm:$0xff]  ;;  %s284_s18 = scalar_lea.vmem %s1387_s6, %s1392_s15 }
  0x25   : > { %391 = vmatpush.msra.mxu1 %v296_v12  ;;  %423 = vmatpush.msra.mxu2 %v297_v13  ;;  %v299_v20 = vld [vmem:[%s1383_s2] sm:$0xff]  ;;  %v287_v22 = vld [vmem:[%s1382_s1 + $0x8] sm:$0xff]  ;;  %v288_v25 = vld [vmem:[%s1382_s1 + $0x10] sm:$0xff] }
  0x26   : > { %455 = vmatpush.msra.mxu3 %v298_v14  ;;  %360 = vmatpush.msra.mxu0 %v291_v15  ;;  %v542_v23 = vld [vmem:[%s1385_s4 + $0x8] sm:$0xff]  ;;  %v541_v24 = vld [vmem:[%s1385_s4] sm:$0xff]  ;;  %v289_v26 = vld [vmem:[%s1382_s1 + $0x18] sm:$0xff] }
  0x27   : > { %392 = vmatpush.msra.mxu1 %v292_v16  ;;  %424 = vmatpush.msra.mxu2 %v293_v17  ;;  %v290_v30 = vld [vmem:[%s1382_s1 + $0x20] sm:$0x1] }
  0x28   : > { %456 = vmatpush.msra.mxu3 %v294_v18  ;;  %939 = vmatmul.msk.f32.vlgmr.msra.gmra.mxu0 %vm329_vm0, %v286_v19 }
  0x29   : > { %944 = vmatmul.msk.f32.vlgmr.msra.gmra.mxu1 %vm329_vm0, %v286_v19  ;;  %949 = vmatmul.msk.f32.vlgmr.msra.gmra.mxu2 %vm329_vm0, %v286_v19 }
  0x2a   : > { %954 = vmatmul.msk.f32.vlgmr.msra.gmra.mxu3 %vm329_vm0, %v286_v19 }
  0x2b   : > { %306 = vperm.xlu1 %1008, %v299_v20   ;;  %316 = vperm.xlu0 %1007, %v301_v21  }
  0x30   : > { %940 = vmatmul.msk.f32.gmra.mxu0 %vm329_vm0, %v287_v22 }
  0x31   : > { %945 = vmatmul.msk.f32.gmra.mxu1 %vm329_vm0, %v287_v22  ;;  %950 = vmatmul.msk.f32.gmra.mxu2 %vm329_vm0, %v287_v22 }
  0x32   : > { %955 = vmatmul.msk.f32.gmra.mxu3 %vm329_vm0, %v287_v22 }
  0x33   : > { %552 = vperm.xlu0 %1007, %v542_v23   ;;  %547 = vperm.xlu1 %1008, %v541_v24  }
  0x38   : > { %941 = vmatmul.msk.f32.gmra.mxu0 %vm329_vm0, %v288_v25 }
  0x39   : > { %946 = vmatmul.msk.f32.gmra.mxu1 %vm329_vm0, %v288_v25  ;;  %951 = vmatmul.msk.f32.gmra.mxu2 %vm329_vm0, %v288_v25 }
  0x3a   : > { %956 = vmatmul.msk.f32.gmra.mxu3 %vm329_vm0, %v288_v25 }
  0x40   : > { %942 = vmatmul.msk.f32.gmra.mxu0 %vm329_vm0, %v289_v26 }
  0x41   : > { %947 = vmatmul.msk.f32.gmra.mxu1 %vm329_vm0, %v289_v26  ;;  %952 = vmatmul.msk.f32.gmra.mxu2 %vm329_vm0, %v289_v26 }
  0x42   : > { %957 = vmatmul.msk.f32.gmra.mxu3 %vm329_vm0, %v289_v26 }
  0x48   : > { %943 = vmatmul.msk.f32.gmra.mxu0 %vm329_vm0, %v290_v30 }
  0x49   : > { %948 = vmatmul.msk.f32.gmra.mxu1 %vm329_vm0, %v290_v30  ;;  %953 = vmatmul.msk.f32.gmra.mxu2 %vm329_vm0, %v290_v30 }
  0x4a   : > { %958 = vmatmul.msk.f32.gmra.mxu3 %vm329_vm0, %v290_v30 }
  0x95   : > { %v312_v29 = vpop.permute.xlu1 %311  ;;  %v322_v31 = vpop.permute.xlu0 %321 }
  0x9d   : > { %v307_v36 = vpop.permute.xlu1 %306  ;;  %v317_v43 = vpop.permute.xlu0 %316 }
  0xa5   : > { %v362_v27 = vpop.f32.mrf.mxu0 }
  0xa6   : > { %v394_v28 = vpop.f32.mrf.mxu1  ;;  %v363_v39 = vadd.f32 %v362_v27, %v307_v36 }
  0xa7   : > { %v395_v42 = vadd.f32 %v394_v28, %v307_v36 }
  0xa8   : > { %v1232_v46 = vmul.f32 0.5, %v363_v39 }
  0xa9   : > { %v1234_v48 = vmul.f32 0.5, %v395_v42 }
  0xaa   : > { %1010 = vtanh.f32 %v1232_v46 }
  0xab   : > { %1012 = vtanh.f32 %v1234_v48 }
  0xac   : > { %v426_v32 = vpop.f32.mrf.mxu2 }
  0xad   : > { %v458_v33 = vpop.f32.mrf.mxu3  ;;  %v365_v34 = vpop.f32.mrf.mxu0  ;;  %v427_v6 = vadd.f32 %v426_v32, %v307_v36  ;;  %v544_v32 = vld [vmem:[%s1385_s4 + $0x18] sm:$0xff] }
  0xae   : > { %v397_v35 = vpop.f32.mrf.mxu1  ;;  %v366_v44 = vadd.f32 %v365_v34, %v312_v29  ;;  %v459_v8 = vadd.f32 %v458_v33, %v307_v36  ;;  %562 = vperm.xlu2 %1009, %v544_v32  }
  0xaf   : > { %v398_v45 = vadd.f32 %v397_v35, %v312_v29  ;;  %v1254_v17 = vmul.f32 0.5, %v427_v6  ;;  %v540_v6 = vld [vmem:[%s1384_s3 + $0x18] sm:$0xff] }
  0xb0   : > { %v1236_v50 = vmul.f32 0.5, %v366_v44  ;;  %v1011_v3 = vpop.eup %1010  ;;  %v1257_v21 = vmul.f32 0.5, %v459_v8 }
  0xb1   : > { %v1238_v51 = vmul.f32 0.5, %v398_v45  ;;  %v1013_v5 = vpop.eup %1012 }
  0xb2   : > { %1014 = vtanh.f32 %v1236_v50  ;;  %v506_v39 = vadd.f32 1.0, %v1013_v5  ;;  %v538_v5 = vld [vmem:[%s1384_s3 + $0x8] sm:$0xff] }
  0xb3   : > { %1016 = vtanh.f32 %v1238_v51 }
  0xb4   : > { %v429_v37 = vpop.f32.mrf.mxu2 }
  0xb5   : > { %v461_v38 = vpop.f32.mrf.mxu3  ;;  %v368_v40 = vpop.f32.mrf.mxu0  ;;  %v430_v54 = vadd.f32 %v429_v37, %v312_v29 }
  0xb6   : > { %v400_v41 = vpop.f32.mrf.mxu1  ;;  %v369_v47 = vadd.f32 %v368_v40, %v317_v43  ;;  %v462_v58 = vadd.f32 %v461_v38, %v312_v29  ;;  %v505_v38 = vadd.f32 1.0, %v1011_v3 }
  0xb7   : > { %v401_v49 = vadd.f32 %v400_v41, %v317_v43  ;;  %v1244_v2 = vmul.f32 0.5, %v430_v54 }
  0xb8   : > { %v481_v57 = vmul.f32 0.5, %v369_v47  ;;  %v1246_v4 = vmul.f32 0.5, %v462_v58  ;;  %v1015_v12 = vpop.eup %1014 }
  0xb9   : > { %v482_v61 = vmul.f32 0.5, %v401_v49  ;;  %v1017_v15 = vpop.eup %1016 }
  0xba   : > { %1018 = vtanh.f32 %v481_v57  ;;  %v510_v35 = vadd.f32 1.0, %v1017_v15 }
  0xbb   : > { %1020 = vtanh.f32 %v482_v61 }
  0xbc   : > { %v432_v52 = vpop.f32.mrf.mxu2  ;;  %v526_v47 = vmul.f32 %v510_v35, %v1238_v51 }
  0xbd   : > { %v464_v53 = vpop.f32.mrf.mxu3  ;;  %v371_v55 = vpop.f32.mrf.mxu0  ;;  %v433_v62 = vadd.f32 %v432_v52, %v317_v43 }
  0xbe   : > { %v403_v56 = vpop.f32.mrf.mxu1  ;;  %v372_v59 = vadd.f32 %v371_v55, %v322_v31  ;;  %v465_v63 = vadd.f32 %v464_v53, %v317_v43  ;;  %v521_v55 = vmul.f32 %v505_v38, %v1232_v46 }
  0xbf   : > { %v404_v60 = vadd.f32 %v403_v56, %v322_v31  ;;  %v1248_v7 = vmul.f32 0.5, %v433_v62  ;;  %v522_v56 = vmul.f32 %v506_v39, %v1234_v48  ;;  %v543_v62 = vld [vmem:[%s1385_s4 + $0x10] sm:$0xff] }
  0xc0   : > { %v485_v0 = vmul.f32 0.5, %v372_v59  ;;  %v1250_v9 = vmul.f32 0.5, %v465_v63  ;;  %v1019_v16 = vpop.eup %1018  ;;  %557 = vperm.xlu2 %1009, %v543_v62  }
  0xc1   : > { %v486_v1 = vmul.f32 0.5, %v404_v60  ;;  %v1021_v20 = vpop.eup %1020  ;;  %v513_v25 = vadd.f32 1.0, %v1019_v16 }
  0xc2   : > { %1022 = vtanh.f32 %v485_v0  ;;  %v514_v28 = vadd.f32 1.0, %v1021_v20 }
  0xc3   : > { %1024 = vtanh.f32 %v486_v1  ;;  %v529_v37 = vmul.f32 %v513_v25, %v481_v57 }
  0xc4   : > { %v435_v10 = vpop.f32.mrf.mxu2  ;;  %1026 = vtanh.f32 %v1244_v2  ;;  %v530_v41 = vmul.f32 %v514_v28, %v482_v61 }
  0xc5   : > { %v467_v11 = vpop.f32.mrf.mxu3  ;;  %v436_v13 = vadd.f32 %v435_v10, %v322_v31  ;;  %1028 = vtanh.f32 %v1246_v4 }
  0xc6   : > { %v468_v14 = vadd.f32 %v467_v11, %v322_v31  ;;  %1030 = vtanh.f32 %v1248_v7  ;;  %v509_v31 = vadd.f32 1.0, %v1015_v12  ;;  %v1311_v8 = vpop.f32.mrf.mxu1 }
  0xc7   : > { %v487_v18 = vmul.f32 0.5, %v436_v13  ;;  %1032 = vtanh.f32 %v1250_v9 }
  0xc8   : > { %v488_v19 = vmul.f32 0.5, %v468_v14  ;;  %v1023_v22 = vpop.eup %1022  ;;  %v525_v43 = vmul.f32 %v509_v31, %v1236_v50  ;;  %v537_v50 = vld [vmem:[%s1384_s3] sm:$0xff] }
  0xc9   : > { %1034 = vtanh.f32 %v487_v18  ;;  %v1025_v23 = vpop.eup %1024  ;;  %v517_v24 = vadd.f32 1.0, %v1023_v22 }
  0xca   : > { %1036 = vtanh.f32 %v488_v19  ;;  %v1027_v26 = vpop.eup %1026  ;;  %v518_v27 = vadd.f32 1.0, %v1025_v23 }
  0xcb   : > { %1038 = vtanh.f32 %v1254_v17  ;;  %v1029_v29 = vpop.eup %1028  ;;  %v533_v30 = vmul.f32 %v517_v24, %v485_v0  ;;  %v511_v59 = vadd.f32 1.0, %v1027_v26 }
  0xcc   : > { %1040 = vtanh.f32 %v1257_v21  ;;  %v1031_v33 = vpop.eup %1030  ;;  %v534_v34 = vmul.f32 %v518_v27, %v486_v1  ;;  %v512_v60 = vadd.f32 1.0, %v1029_v29  ;;  %v1313_v11 = vpop.f32.mrf.mxu2 }
  0xcd   : > { %v1033_v36 = vpop.eup %1032  ;;  %590 = vmatpush.msrb.mxu0 %v533_v30  ;;  %v515_v52 = vadd.f32 1.0, %v1031_v33  ;;  %v527_v63 = vmul.f32 %v511_v59, %v1244_v2  ;;  %v303_v2 = vld [vmem:[%s1383_s2 + $0x20] sm:$0x1]  ;;  %v1315_v12 = vpop.f32.mrf.mxu3 }
  0xce   : > { %619 = vmatpush.msrb.mxu1 %v534_v34  ;;  %v516_v53 = vadd.f32 1.0, %v1033_v36  ;;  %v528_v0 = vmul.f32 %v512_v60, %v1246_v4  ;;  %326 = vperm.xlu2 %1009, %v303_v2   ;;  %v539_v4 = vld [vmem:[%s1384_s3 + $0x10] sm:$0xff]  ;;  %v548_v29 = vpop.permute.xlu1 %547 }
  0xcf   : > { %v1035_v40 = vpop.eup %1034  ;;  %591 = vmatpush.msrb.mxu0 %v529_v37  ;;  %v531_v51 = vmul.f32 %v515_v52, %v1248_v7  ;;  %v1309_v7 = vpop.f32.mrf.mxu0 }
  0xd0   : > { %v1037_v42 = vpop.eup %1036  ;;  %v519_v44 = vadd.f32 1.0, %v1035_v40  ;;  %620 = vmatpush.msrb.mxu1 %v530_v41  ;;  %v532_v46 = vmul.f32 %v516_v53, %v1250_v9 }
  0xd1   : > { %v1039_v45 = vpop.eup %1038  ;;  %v520_v49 = vadd.f32 1.0, %v1037_v42  ;;  %592 = vmatpush.msrb.mxu0 %v525_v43 }
  0xd2   : > { %v1041_v54 = vpop.eup %1040  ;;  %v535_v57 = vmul.f32 %v519_v44, %v487_v18  ;;  %621 = vmatpush.msrb.mxu1 %v526_v47  ;;  %v507_v61 = vadd.f32 1.0, %v1039_v45  ;;  %v553_v18 = vpop.permute.xlu0 %552 }
  0xd3   : > { %v536_v58 = vmul.f32 %v520_v49, %v488_v19  ;;  %593 = vmatpush.msrb.mxu0 %v521_v55  ;;  %v508_v48 = vadd.f32 1.0, %v1041_v54 }
  0xd4   : > { %648 = vmatpush.msrb.mxu2 %v535_v57  ;;  %622 = vmatpush.msrb.mxu1 %v522_v56  ;;  %v523_v1 = vmul.f32 %v507_v61, %v1254_v17 }
  0xd5   : > { %677 = vmatpush.msrb.mxu3 %v536_v58  ;;  %959 = vmatmul.msk.f32.vlgmr.msrb.gmra.mxu0 %vm565_vm1, %v537_v50  ;;  %v524_v3 = vmul.f32 %v508_v48, %v1257_v21 }
  0xd6   : > { %963 = vmatmul.msk.f32.vlgmr.msrb.gmra.mxu1 %vm565_vm1, %v537_v50  ;;  %649 = vmatpush.msrb.mxu2 %v531_v51 }
  0xd7   : > { %678 = vmatpush.msrb.mxu3 %v532_v46 }
  0xd8   : > { %650 = vmatpush.msrb.mxu2 %v527_v63 }
  0xd9   : > { %679 = vmatpush.msrb.mxu3 %v528_v0 }
  0xda   : > { %651 = vmatpush.msrb.mxu2 %v523_v1 }
  0xdb   : > { %680 = vmatpush.msrb.mxu3 %v524_v3  ;;  %967 = vmatmul.msk.f32.vlgmr.msrb.gmra.mxu2 %vm565_vm1, %v537_v50 }
  0xdc   : > { %971 = vmatmul.msk.f32.vlgmr.msrb.gmra.mxu3 %vm565_vm1, %v537_v50 }
  0xdd   : > { %960 = vmatmul.msk.f32.gmra.mxu0 %vm565_vm1, %v538_v5 }
  0xde   : > { %964 = vmatmul.msk.f32.gmra.mxu1 %vm565_vm1, %v538_v5 }
  0xe3   : > { %968 = vmatmul.msk.f32.gmra.mxu2 %vm565_vm1, %v538_v5 }
  0xe4   : > { %972 = vmatmul.msk.f32.gmra.mxu3 %vm565_vm1, %v538_v5 }
  0xe5   : > { %961 = vmatmul.msk.f32.gmra.mxu0 %vm565_vm1, %v539_v4 }
  0xe6   : > { %965 = vmatmul.msk.f32.gmra.mxu1 %vm565_vm1, %v539_v4 }
  0xeb   : > { %969 = vmatmul.msk.f32.gmra.mxu2 %vm565_vm1, %v539_v4 }
  0xec   : > { %973 = vmatmul.msk.f32.gmra.mxu3 %vm565_vm1, %v539_v4 }
  0xed   : > { %962 = vmatmul.msk.f32.gmra.mxu0 %vm565_vm1, %v540_v6 }
  0xee   : > { %966 = vmatmul.msk.f32.gmra.mxu1 %vm565_vm1, %v540_v6 }
  0xf3   : > { %970 = vmatmul.msk.f32.gmra.mxu2 %vm565_vm1, %v540_v6 }
  0xf4   : > { %974 = vmatmul.msk.f32.gmra.mxu3 %vm565_vm1, %v540_v6 }
 0x108   : > { %v1317_v13 = vpop.permute.xlu2 %562 }
 0x11a   : > { %v558_v22 = vpop.permute.xlu2 %557 }
 0x152   : > { %v595_v9 = vpop.f32.mrf.mxu0 }
 0x153   : > { %v624_v10 = vpop.f32.mrf.mxu1  ;;  %v596_v31 = vadd.f32 %v595_v9, %v548_v29 }
 0x154   : > { %v625_v33 = vadd.f32 %v624_v10, %v548_v29 }
 0x155   : > { %v1327_v39 = vmul.f32 0.5, %v596_v31 }
 0x156   : > { %v1329_v42 = vmul.f32 0.5, %v625_v33 }
 0x15a   : > { %v598_v14 = vpop.f32.mrf.mxu0 }
 0x15b   : > { %v627_v15 = vpop.f32.mrf.mxu1  ;;  %v599_v21 = vadd.f32 %v598_v14, %v553_v18 }
 0x15c   : > { %v628_v23 = vadd.f32 %v627_v15, %v553_v18 }
 0x15d   : > { %v1319_v28 = vmul.f32 0.5, %v599_v21 }
 0x15e   : > { %v653_v16 = vpop.f32.mrf.mxu2  ;;  %v1321_v30 = vmul.f32 0.5, %v628_v23 }
 0x15f   : > { %v682_v17 = vpop.f32.mrf.mxu3  ;;  %1042 = vtanh.f32 %v1319_v28  ;;  %v654_v52 = vadd.f32 %v653_v16, %v548_v29 }
 0x160   : > { %1044 = vtanh.f32 %v1321_v30  ;;  %v683_v51 = vadd.f32 %v682_v17, %v548_v29  ;;  %v758_v29 = vld [vmem:[%s1386_s5] sm:$0x1] }
 0x161   : > { %v1337_v60 = vmul.f32 0.5, %v654_v52 }
 0x162   : > { %v601_v19 = vpop.f32.mrf.mxu0 }
 0x163   : > { %v630_v20 = vpop.f32.mrf.mxu1  ;;  %v602_v24 = vadd.f32 %v601_v19, %v558_v22 }
 0x164   : > { %v631_v25 = vadd.f32 %v630_v20, %v558_v22  ;;  %v697_v20 = vmul.f32 0.5, %v683_v51 }
 0x165   : > { %v702_v32 = vmul.f32 0.5, %v602_v24  ;;  %v1043_v49 = vpop.eup %1042 }
 0x166   : > { %v656_v26 = vpop.f32.mrf.mxu2  ;;  %v703_v34 = vmul.f32 0.5, %v631_v25  ;;  %v1045_v54 = vpop.eup %1044  ;;  %v730_v10 = vadd.f32 1.0, %v1043_v49 }
 0x167   : > { %v685_v27 = vpop.f32.mrf.mxu3  ;;  %1046 = vtanh.f32 %v702_v32  ;;  %v657_v43 = vadd.f32 %v656_v26, %v553_v18  ;;  %v731_v14 = vadd.f32 1.0, %v1045_v54 }
 0x168   : > { %1048 = vtanh.f32 %v703_v34  ;;  %v686_v47 = vadd.f32 %v685_v27, %v553_v18  ;;  %v746_v24 = vmul.f32 %v730_v10, %v1319_v28  ;;  %v868_v10 = vlaneseq }
 0x169   : > { %v1333_v55 = vmul.f32 0.5, %v657_v43  ;;  %v747_v25 = vmul.f32 %v731_v14, %v1321_v30 }
 0x16a   : > { %v604_v35 = vpop.f32.mrf.mxu0  ;;  %v1335_v50 = vmul.f32 0.5, %v686_v47  ;;  %vm870_vm5 = vcmp.lt.s32.totalorder %v868_v10, 512 }
 0x16b   : > { %v633_v36 = vpop.f32.mrf.mxu1  ;;  %v605_v37 = vadd.f32 %v604_v35, %v1317_v13 }
 0x16c   : > { %v634_v38 = vadd.f32 %v633_v36, %v1317_v13 }
 0x16d   : > { %v706_v40 = vmul.f32 0.5, %v605_v37  ;;  %v1047_v57 = vpop.eup %1046 }
 0x16e   : > { %v707_v41 = vmul.f32 0.5, %v634_v38  ;;  %v659_v44 = vpop.f32.mrf.mxu2  ;;  %v1049_v58 = vpop.eup %1048  ;;  %v734_v48 = vadd.f32 1.0, %v1047_v57 }
 0x16f   : > { %v688_v45 = vpop.f32.mrf.mxu3  ;;  %1050 = vtanh.f32 %v706_v40  ;;  %v660_v53 = vadd.f32 %v659_v44, %v558_v22  ;;  %v735_v5 = vadd.f32 1.0, %v1049_v58  ;;  %v327_v57 = vpop.permute.xlu2 %326 }
 0x170   : > { %1052 = vtanh.f32 %v707_v41  ;;  %v689_v56 = vadd.f32 %v688_v45, %v558_v22  ;;  %v750_v21 = vmul.f32 %v734_v48, %v702_v32  ;;  %v375_v58 = vadd.f32 %v1309_v7, %v327_v57 }
 0x171   : > { %1054 = vtanh.f32 %v1327_v39  ;;  %v1339_v46 = vmul.f32 0.5, %v660_v53  ;;  %v751_v23 = vmul.f32 %v735_v5, %v703_v34  ;;  %v471_v7 = vadd.f32 %v1315_v12, %v327_v57 }
 0x172   : > { %1056 = vtanh.f32 %v1329_v42  ;;  %v705_v63 = vmul.f32 0.5, %v689_v56 }
 0x173   : > { %1058 = vtanh.f32 %v1333_v55 }
 0x174   : > { %1060 = vtanh.f32 %v1335_v50 }
 0x175   : > { %v1051_v59 = vpop.eup %1050  ;;  %1062 = vtanh.f32 %v1339_v46 }
 0x176   : > { %v1053_v61 = vpop.eup %1052  ;;  %v738_v62 = vadd.f32 1.0, %v1051_v59  ;;  %v662_v0 = vpop.f32.mrf.mxu2  ;;  %1064 = vtanh.f32 %v705_v63 }
 0x177   : > { %v691_v1 = vpop.f32.mrf.mxu3  ;;  %v1055_v3 = vpop.eup %1054  ;;  %v739_v2 = vadd.f32 1.0, %v1053_v61  ;;  %v663_v4 = vadd.f32 %v662_v0, %v1317_v13 }
 0x178   : > { %v692_v6 = vadd.f32 %v691_v1, %v1317_v13  ;;  %v1057_v9 = vpop.eup %1056  ;;  %v754_v15 = vmul.f32 %v738_v62, %v706_v40  ;;  %v726_v19 = vadd.f32 1.0, %v1055_v3  ;;  %v439_v1 = vadd.f32 %v1313_v11, %v327_v57 }
 0x179   : > { %v755_v16 = vmul.f32 %v739_v2, %v707_v41  ;;  %v708_v17 = vmul.f32 0.5, %v663_v4  ;;  %v727_v22 = vadd.f32 1.0, %v1057_v9  ;;  %v1059_v13 = vpop.eup %1058 }
 0x17a   : > { %v709_v18 = vmul.f32 0.5, %v692_v6  ;;  %774 = vmatpush.msra.mxu0 %v754_v15  ;;  %v1061_v26 = vpop.eup %1060  ;;  %v742_v27 = vmul.f32 %v726_v19, %v1327_v39  ;;  %v732_v40 = vadd.f32 1.0, %v1059_v13 }
 0x17b   : > { %1066 = vtanh.f32 %v708_v17  ;;  %794 = vmatpush.msra.mxu1 %v755_v16  ;;  %v1063_v31 = vpop.eup %1062  ;;  %v743_v32 = vmul.f32 %v727_v22, %v1329_v42  ;;  %v733_v43 = vadd.f32 1.0, %v1061_v26 }
 0x17c   : > { %1068 = vtanh.f32 %v709_v18  ;;  %775 = vmatpush.msra.mxu0 %v750_v21  ;;  %v1065_v28 = vpop.eup %1064  ;;  %v736_v34 = vadd.f32 1.0, %v1063_v31  ;;  %v748_v52 = vmul.f32 %v732_v40, %v1333_v55  ;;  %v407_v55 = vadd.f32 %v1311_v8, %v327_v57 }
 0x17d   : > { %1070 = vtanh.f32 %v1337_v60  ;;  %795 = vmatpush.msra.mxu1 %v751_v23  ;;  %v737_v37 = vadd.f32 1.0, %v1065_v28  ;;  %v749_v53 = vmul.f32 %v733_v43, %v1335_v50 }
 0x17e   : > { %1072 = vtanh.f32 %v697_v20  ;;  %776 = vmatpush.msra.mxu0 %v746_v24  ;;  %v752_v45 = vmul.f32 %v736_v34, %v1339_v46 }
 0x17f   : > { %796 = vmatpush.msra.mxu1 %v747_v25  ;;  %v753_v49 = vmul.f32 %v737_v37, %v705_v63 }
 0x180   : > { %777 = vmatpush.msra.mxu0 %v742_v27 }
 0x181   : > { %v1067_v33 = vpop.eup %1066  ;;  %797 = vmatpush.msra.mxu1 %v743_v32  ;;  %975 = vmatmul.msk.f32.vlgmr.msra.gmra.mxu0 %vm565_vm1, %v758_v29 }
 0x182   : > { %v1069_v30 = vpop.eup %1068  ;;  %v740_v35 = vadd.f32 1.0, %v1067_v33  ;;  %976 = vmatmul.msk.f32.vlgmr.msra.gmra.mxu1 %vm565_vm1, %v758_v29 }
 0x183   : > { %v1071_v36 = vpop.eup %1070  ;;  %v741_v38 = vadd.f32 1.0, %v1069_v30 }
 0x184   : > { %v1073_v39 = vpop.eup %1072  ;;  %v756_v41 = vmul.f32 %v740_v35, %v708_v17  ;;  %v728_v44 = vadd.f32 1.0, %v1071_v36 }
 0x185   : > { %v757_v42 = vmul.f32 %v741_v38, %v709_v18  ;;  %v729_v47 = vadd.f32 1.0, %v1073_v39 }
 0x186   : > { %814 = vmatpush.msra.mxu2 %v756_v41  ;;  %v744_v54 = vmul.f32 %v728_v44, %v1337_v60 }
 0x187   : > { %834 = vmatpush.msra.mxu3 %v757_v42  ;;  %v745_v56 = vmul.f32 %v729_v47, %v697_v20 }
 0x188   : > { %815 = vmatpush.msra.mxu2 %v752_v45 }
 0x189   : > { %835 = vmatpush.msra.mxu3 %v753_v49 }
 0x18a   : > { %816 = vmatpush.msra.mxu2 %v748_v52 }
 0x18b   : > { %836 = vmatpush.msra.mxu3 %v749_v53 }
 0x18c   : > { %817 = vmatpush.msra.mxu2 %v744_v54 }
 0x18d   : > { %837 = vmatpush.msra.mxu3 %v745_v56  ;;  %977 = vmatmul.msk.f32.vlgmr.msra.gmra.mxu2 %vm565_vm1, %v758_v29 }
 0x18e   : > { %978 = vmatmul.msk.f32.vlgmr.msra.gmra.mxu3 %vm565_vm1, %v758_v29 }
 0x1fe   : > { %v779_v59 = vpop.f32.mrf.mxu0 }
 0x1ff   : > { %v842_v51 = vadd.f32 %v779_v59, %v375_v58  ;;  %v799_v50 = vpop.f32.mrf.mxu1 }
 0x200   : > { %v843_v46 = vadd.f32 %v799_v50, %v407_v55 }
 0x201   : > { %1074 = vtanh.f32 %v842_v51 }
 0x202   : > { %1076 = vtanh.f32 %v843_v46 }
 0x207   : > { %v1075_v60 = vpop.eup %1074 }
 0x208   : > { %v1077_v61 = vpop.eup %1076  ;;  %v850_v62 = vmul.f32 5.0, %v1075_v60 }
 0x209   : > { %v851_v48 = vmul.f32 5.0, %v1077_v61 }
 0x20b   : > { %v858_v63 = vrot.slane %v851_v48, 7 }
 0x20d   : > { %v862_v0 = vsel %vm861_vm2, %v850_v62, %v858_v63 }
 0x210   : > { %v819_v3 = vpop.f32.mrf.mxu2 }
 0x211   : > { %v844_v5 = vadd.f32 %v819_v3, %v439_v1  ;;  %v839_v8 = vpop.f32.mrf.mxu3 }
 0x212   : > { %v845_v2 = vadd.f32 %v839_v8, %v471_v7 }
 0x213   : > { %1078 = vtanh.f32 %v844_v5 }
 0x214   : > { %1080 = vtanh.f32 %v845_v2 }
 0x219   : > { %v1079_v4 = vpop.eup %1078 }
 0x21a   : > { %v1081_v6 = vpop.eup %1080  ;;  %v852_v9 = vmul.f32 5.0, %v1079_v4 }
 0x21b   : > { %v853_v14 = vmul.f32 5.0, %v1081_v6 }
 0x21c   : > { %v859_v15 = vrot.slane %v852_v9, 6 }
 0x21d   : > { %v860_v11 = vrot.slane %v853_v14, 5 }
 0x21f   : > { %v864_v12 = vsel %vm863_vm3, %v859_v15, %v860_v11 }
 0x220   : > { %v866_v16 = vsel %vm865_vm4, %v862_v0, %v864_v12 }
 0x221   : > { %872 = vst.msk [vmem:[%s284_s18] sm:$0xf] %vm870_vm5, %v866_v16 }
 0x222 PF: > { %p13_p9 = scmp.ge.s32.totalorder %s1159_s25, 4   ;;  %s1388_s21 = smov %s1100_s22 }
 0x223   : > { %s1389_s22 = smov %s1168_s28  ;;  %s1390_s23 = smov %s1159_s25 }
 0x224   :  { %15 = sbr.rel (!%p13_p9) target bundleno = 2 (0x2), region = 102 }

</bundles_post_ra>
